<compile_context>
chip_gen: v7x
topology: tpu7x:2x2x1
jax: 0.10.0
libtpu: 0.0.40
codegen_flags: <defaults>
</compile_context>

<pallas_src>
import functools

import jax
import jax.numpy as jnp
from jax.experimental import pallas as pl
from jax.experimental.pallas import tpu as pltpu

FT_OUT = 512          # self.ft_out in Policy.__init__
HIDDEN_DIM = 128      # hidden_dim
NUM_ACTIONS = 8       # num_actions
NONLIN = "relu"       # nonlin ('relu' or 'tanh')


def _round_up(n, m):
    return (n + m - 1) // m * m


def _cdiv(a, b):
    return -(-a // b)


def _apply_nonlin(x, nonlin):
    if nonlin == "relu":
        return jnp.maximum(x, 0.0)
    elif nonlin == "tanh":
        return jnp.tanh(x)
    return x


def _nn_policy_kernel(x_ref, w1_ref, b1_ref, w2_ref, b2_ref, w3_ref, b3_ref,
                      out_ref, *, nonlin):
    """Full MLP hot path: two hidden Linear+nonlin layers and the output head.

    The f32 feature tile is cast to bf16 in-kernel (MXU-native streams),
    accumulation / bias add / nonlinearity stay in f32.
    """
    x = x_ref[...].astype(jnp.bfloat16)

    # Layer 1: (bt, 512) @ (512, H) -> f32
    h1 = jnp.dot(x, w1_ref[...], preferred_element_type=jnp.float32) + b1_ref[...]
    h1 = _apply_nonlin(h1, nonlin)

    # Layer 2: (bt, H) @ (H, H) -> f32
    h2 = jnp.dot(h1.astype(jnp.bfloat16), w2_ref[...],
                 preferred_element_type=jnp.float32) + b2_ref[...]
    h2 = _apply_nonlin(h2, nonlin)

    # Output head: (bt, H) @ (H, A) -> f32, A == num_actions (narrow store is
    # hidden under DMA in this memory-bound kernel).
    logits = jnp.dot(h2.astype(jnp.bfloat16), w3_ref[...],
                     preferred_element_type=jnp.float32) + b3_ref[...]
    out_ref[...] = logits.astype(out_ref.dtype)


def _select_batch_tile(B, batch_tile):
    """Pick the batch tile and (static) grid step count.

    - B <= 64: latency path, single step, tile = round_up(B, 8).
    - 64 < B < 512: single step, tile = round_up(B, 8) (no 256-row padding).
    - B >= 512: large multiple-of-256 tile (default cap 2048), step count
      forced even (>= 2) so v7x's two TensorCores split the 'parallel' axis
      evenly.  Note: batch_tile is rounded down to a multiple of 256 here.
    """
    bt_cap = max(256, (int(batch_tile) // 256) * 256)
    if B < 512:
        bt = _round_up(max(B, 8), 8)
        return bt, 1
    bt = min(bt_cap, _round_up(B, 256))
    steps = _cdiv(B, bt)
    for _ in range(4):
        if steps % 2 == 0:
            break
        desired = steps + 1
        new_bt = max(256, _round_up(_cdiv(B, desired), 256))
        new_steps = _cdiv(B, new_bt)
        if new_steps == steps:
            break
        bt, steps = new_bt, new_steps
    return bt, steps


def nn_policy_forward(feats, params, *, nonlin=NONLIN, batch_tile=2048):
    """feats: (B, FT_OUT) float32 features (output of the feature transformer).

    `params` must be pre-converted with prepare_params() (bf16 weights stored
    as (in, out), f32 (1, dim) biases) so no per-call casts are emitted.
    Returns (B, num_actions) float32 logits.
    """
    B, F = feats.shape
    assert F == FT_OUT, f"expected {FT_OUT}-dim features, got {F}"
    w1, b1, w2, b2, w3, b3 = params
    H = w1.shape[1]
    A = w3.shape[1]

    bt, steps = _select_batch_tile(B, batch_tile)

    kernel = functools.partial(_nn_policy_kernel, nonlin=nonlin)

    out = pl.pallas_call(
        kernel,
        out_shape=jax.ShapeDtypeStruct((B, A), jnp.float32),
        grid_spec=pltpu.PrefetchScalarGridSpec(
            num_scalar_prefetch=0,
            grid=(steps,),
            in_specs=[
                # activations: tile the batch axis (partial last block handled
                # by Pallas boundary masking; padded rows are never written).
                pl.BlockSpec((bt, F), lambda i: (i, 0)),
                # weights / biases: small, constant index_map -> fetched once,
                # fully resident in VMEM across the batch-parallel grid.
                pl.BlockSpec((F, H), lambda i: (0, 0)),
                pl.BlockSpec((1, H), lambda i: (0, 0)),
                pl.BlockSpec((H, H), lambda i: (0, 0)),
                pl.BlockSpec((1, H), lambda i: (0, 0)),
                pl.BlockSpec((H, A), lambda i: (0, 0)),
                pl.BlockSpec((1, A), lambda i: (0, 0)),
            ],
            out_specs=pl.BlockSpec((bt, A), lambda i: (i, 0)),
        ),
        compiler_params=pltpu.CompilerParams(
            dimension_semantics=("parallel",),
            # 32 MiB: matches v6e/v7x scoped default, raises v5e's 16 MiB so
            # a 2048-row double-buffered f32 input tile never spills.
            vmem_limit_bytes=32 * 1024 * 1024,
        ),
    )(feats, w1, b1, w2, b2, w3, b3)

    return out


def prepare_params(params):
    """One-time conversion: bf16 weight streams, f32 biases (hoisted out of
    the per-call wrapper per the perf review)."""
    w1, b1, w2, b2, w3, b3 = params
    return (w1.astype(jnp.bfloat16), b1.astype(jnp.float32),
            w2.astype(jnp.bfloat16), b2.astype(jnp.float32),
            w3.astype(jnp.bfloat16), b3.astype(jnp.float32))


def init_params(key, ft_out=FT_OUT, hidden_dim=HIDDEN_DIM,
                num_actions=NUM_ACTIONS, zero_head=True):
    """Deterministic synthetic init mirroring the module's shapes.

    linear1 / linear2: random uniform stand-in for PyTorch's default init.
    output_linear: weight and bias multiplied by 0.0, exactly as in
    NNPolicy.__init__ (set zero_head=False to exercise the head with data).
    """
    k1, k2, k3, k4, k5, k6 = jax.random.split(key, 6)
    lim1 = 1.0 / jnp.sqrt(ft_out)
    lim2 = 1.0 / jnp.sqrt(hidden_dim)
    # stored as (in, out)  == PyTorch weight.T
    w1 = jax.random.uniform(k1, (ft_out, hidden_dim), jnp.float32, -lim1, lim1)
    b1 = jax.random.uniform(k2, (1, hidden_dim), jnp.float32, -lim1, lim1)
    w2 = jax.random.uniform(k3, (hidden_dim, hidden_dim), jnp.float32, -lim2, lim2)
    b2 = jax.random.uniform(k4, (1, hidden_dim), jnp.float32, -lim2, lim2)
    if zero_head:
        # output_linear.weight.data.mul_(0.0); output_linear.bias.data.mul_(0.0)
        w3 = jnp.zeros((hidden_dim, num_actions), jnp.float32)
        b3 = jnp.zeros((1, num_actions), jnp.float32)
    else:
        w3 = jax.random.uniform(k5, (hidden_dim, num_actions), jnp.float32, -lim2, lim2)
        b3 = jax.random.uniform(k6, (1, num_actions), jnp.float32, -lim2, lim2)
    return (w1, b1, w2, b2, w3, b3)


def _reference_forward(feats, params, nonlin=NONLIN):
    """Reference matching the kernel's mixed precision (bf16 streams, f32 acc).

    bf16 streams can deviate from the f32 PyTorch module by up to ~1e-2
    relative — acceptable for a policy head, tolerance chosen accordingly.
    """
    w1, b1, w2, b2, w3, b3 = params
    act = (lambda v: jnp.maximum(v, 0.0)) if nonlin == "relu" else jnp.tanh
    x = feats.astype(jnp.bfloat16)
    h1 = act(jnp.dot(x, w1.astype(jnp.bfloat16),
                     preferred_element_type=jnp.float32) + b1.astype(jnp.float32))
    h2 = act(jnp.dot(h1.astype(jnp.bfloat16), w2.astype(jnp.bfloat16),
                     preferred_element_type=jnp.float32) + b2.astype(jnp.float32))
    return jnp.dot(h2.astype(jnp.bfloat16), w3.astype(jnp.bfloat16),
                   preferred_element_type=jnp.float32) + b3.astype(jnp.float32)


if __name__ == "__main__":
    key = jax.random.PRNGKey(0)
    k_feat, k_feat2, k_param = jax.random.split(key, 3)

    # ---- tiny batch (per-env-step action-selection path) --------------------
    batch = 8
    feats = jax.random.normal(k_feat, (batch, FT_OUT), jnp.float32)

    # 1) Module-faithful init (zeroed output head): logits must be exactly 0.
    params0 = prepare_params(init_params(k_param, zero_head=True))
    logits0 = jax.block_until_ready(nn_policy_forward(feats, params0, nonlin=NONLIN))
    assert logits0.shape == (batch, NUM_ACTIONS)
    assert jnp.allclose(logits0, 0.0, atol=1e-6), "zero-init head should give zero logits"

    # 2) Non-zero head to exercise the full compute path against the reference.
    params_raw = init_params(k_param, zero_head=False)
    params1 = prepare_params(params_raw)
    logits1 = jax.block_until_ready(nn_policy_forward(feats, params1, nonlin=NONLIN))
    ref1 = _reference_forward(feats, params_raw, NONLIN)
    assert logits1.shape == (batch, NUM_ACTIONS)
    assert jnp.allclose(logits1, ref1, atol=1e-2, rtol=1e-2), "mismatch vs reference (B=8)"

    # 3) Larger, non-tile-divisible batch: exercises the multi-step grid
    #    (even step count for v7x) and Pallas boundary masking of the partial
    #    last block.
    batch2 = 600
    feats2 = jax.random.normal(k_feat2, (batch2, FT_OUT), jnp.float32)
    logits2 = jax.block_until_ready(nn_policy_forward(feats2, params1, nonlin=NONLIN))
    ref2 = _reference_forward(feats2, params_raw, NONLIN)
    assert logits2.shape == (batch2, NUM_ACTIONS)
    assert jnp.allclose(logits2, ref2, atol=1e-2, rtol=1e-2), "mismatch vs reference (B=600)"

    print("KERNEL_OK")
</pallas_src>

<mosaic_0001>
module attributes {stable_mosaic.version = 11 : i64} {
  func.func @_nn_policy_kernel(%arg0: i32, %arg1: memref<8x512xf32, #tpu.memory_space<vmem>>, %arg2: memref<512x128xbf16, #tpu.memory_space<vmem>>, %arg3: memref<1x128xf32, #tpu.memory_space<vmem>>, %arg4: memref<128x128xbf16, #tpu.memory_space<vmem>>, %arg5: memref<1x128xf32, #tpu.memory_space<vmem>>, %arg6: memref<128x8xbf16, #tpu.memory_space<vmem>>, %arg7: memref<1x8xf32, #tpu.memory_space<vmem>>, %arg8: memref<8x8xf32, #tpu.memory_space<vmem>>) attributes {dimension_semantics = [#tpu.dimension_semantics<parallel>], iteration_bounds = array<i64: 1>, scalar_prefetch = 0 : i64, scratch_operands = 0 : i64, tpu.core_type = #tpu.core_type<tc>, window_params = [{transform_indices = @transform_0, window_bounds = array<i64: 8, 512>}, {pipeline_mode = #tpu.pipeline_mode<synchronous>, transform_indices = @transform_1, window_bounds = array<i64: 512, 128>}, {pipeline_mode = #tpu.pipeline_mode<synchronous>, transform_indices = @transform_2, window_bounds = array<i64: 1, 128>}, {pipeline_mode = #tpu.pipeline_mode<synchronous>, transform_indices = @transform_3, window_bounds = array<i64: 128, 128>}, {pipeline_mode = #tpu.pipeline_mode<synchronous>, transform_indices = @transform_4, window_bounds = array<i64: 1, 128>}, {pipeline_mode = #tpu.pipeline_mode<synchronous>, transform_indices = @transform_5, window_bounds = array<i64: 128, 8>}, {pipeline_mode = #tpu.pipeline_mode<synchronous>, transform_indices = @transform_6, window_bounds = array<i64: 1, 8>}, {transform_indices = @transform_7, window_bounds = array<i64: 8, 8>}]} {
    %c0 = arith.constant 0 : index
    %c0_0 = arith.constant 0 : index
    %0 = vector.load %arg1[%c0, %c0_0] : memref<8x512xf32, #tpu.memory_space<vmem>>, vector<8x512xf32>
    %1 = arith.truncf %0 : vector<8x512xf32> to vector<8x512xbf16>
    %c0_1 = arith.constant 0 : index
    %c0_2 = arith.constant 0 : index
    %2 = vector.load %arg2[%c0_1, %c0_2] : memref<512x128xbf16, #tpu.memory_space<vmem>>, vector<512x128xbf16>
    %cst = arith.constant dense<0.000000e+00> : vector<8x128xf32>
    %3 = tpu.matmul %1, %2, %cst {dimension_numbers = #tpu.dot_dimension_numbers<[1], [0], [0], [1], [0, 0, 1, 1], [], []>} : vector<8x512xbf16>, vector<512x128xbf16>, vector<8x128xf32> -> vector<8x128xf32>
    %c0_3 = arith.constant 0 : index
    %c0_4 = arith.constant 0 : index
    %4 = vector.load %arg3[%c0_3, %c0_4] : memref<1x128xf32, #tpu.memory_space<vmem>>, vector<1x128xf32>
    %5 = vector.broadcast %4 : vector<1x128xf32> to vector<8x128xf32>
    %6 = arith.addf %3, %5 : vector<8x128xf32>
    %cst_5 = arith.constant 0.000000e+00 : f32
    %7 = vector.broadcast %cst_5 : f32 to vector<8x128xf32>
    %8 = arith.maximumf %6, %7 : vector<8x128xf32>
    %9 = arith.truncf %8 : vector<8x128xf32> to vector<8x128xbf16>
    %c0_6 = arith.constant 0 : index
    %c0_7 = arith.constant 0 : index
    %10 = vector.load %arg4[%c0_6, %c0_7] : memref<128x128xbf16, #tpu.memory_space<vmem>>, vector<128x128xbf16>
    %cst_8 = arith.constant dense<0.000000e+00> : vector<8x128xf32>
    %11 = tpu.matmul %9, %10, %cst_8 {dimension_numbers = #tpu.dot_dimension_numbers<[1], [0], [0], [1], [0, 0, 1, 1], [], []>} : vector<8x128xbf16>, vector<128x128xbf16>, vector<8x128xf32> -> vector<8x128xf32>
    %c0_9 = arith.constant 0 : index
    %c0_10 = arith.constant 0 : index
    %12 = vector.load %arg5[%c0_9, %c0_10] : memref<1x128xf32, #tpu.memory_space<vmem>>, vector<1x128xf32>
    %13 = vector.broadcast %12 : vector<1x128xf32> to vector<8x128xf32>
    %14 = arith.addf %11, %13 : vector<8x128xf32>
    %cst_11 = arith.constant 0.000000e+00 : f32
    %15 = vector.broadcast %cst_11 : f32 to vector<8x128xf32>
    %16 = arith.maximumf %14, %15 : vector<8x128xf32>
    %17 = arith.truncf %16 : vector<8x128xf32> to vector<8x128xbf16>
    %c0_12 = arith.constant 0 : index
    %c0_13 = arith.constant 0 : index
    %18 = vector.load %arg6[%c0_12, %c0_13] : memref<128x8xbf16, #tpu.memory_space<vmem>>, vector<128x8xbf16>
    %cst_14 = arith.constant dense<0.000000e+00> : vector<8x8xf32>
    %19 = tpu.matmul %17, %18, %cst_14 {dimension_numbers = #tpu.dot_dimension_numbers<[1], [0], [0], [1], [0, 0, 1, 1], [], []>} : vector<8x128xbf16>, vector<128x8xbf16>, vector<8x8xf32> -> vector<8x8xf32>
    %c0_15 = arith.constant 0 : index
    %c0_16 = arith.constant 0 : index
    %20 = vector.load %arg7[%c0_15, %c0_16] : memref<1x8xf32, #tpu.memory_space<vmem>>, vector<1x8xf32>
    %21 = vector.broadcast %20 : vector<1x8xf32> to vector<8x8xf32>
    %22 = arith.addf %19, %21 : vector<8x8xf32>
    %c0_17 = arith.constant 0 : index
    %c0_18 = arith.constant 0 : index
    %23 = vector.load %arg8[%c0_17, %c0_18] : memref<8x8xf32, #tpu.memory_space<vmem>>, vector<8x8xf32>
    tpu.vector_store %arg8[%c0_17, %c0_18], %22 {strides = array<i32>} : memref<8x8xf32, #tpu.memory_space<vmem>>, vector<8x8xf32>,
    return
  }
  func.func @transform_0(%arg0: i32) -> (i32, i32) {
    %c0_i32 = arith.constant 0 : i32
    %c0_i32_0 = arith.constant 0 : i32
    return %arg0, %c0_i32 : i32, i32
  }
  func.func @transform_1(%arg0: i32) -> (i32, i32) {
    %c0_i32 = arith.constant 0 : i32
    %c0_i32_0 = arith.constant 0 : i32
    %c0_i32_1 = arith.constant 0 : i32
    return %c0_i32, %c0_i32_0 : i32, i32
  }
  func.func @transform_2(%arg0: i32) -> (i32, i32) {
    %c0_i32 = arith.constant 0 : i32
    %c0_i32_0 = arith.constant 0 : i32
    %c0_i32_1 = arith.constant 0 : i32
    return %c0_i32, %c0_i32_0 : i32, i32
  }
  func.func @transform_3(%arg0: i32) -> (i32, i32) {
    %c0_i32 = arith.constant 0 : i32
    %c0_i32_0 = arith.constant 0 : i32
    %c0_i32_1 = arith.constant 0 : i32
    return %c0_i32, %c0_i32_0 : i32, i32
  }
  func.func @transform_4(%arg0: i32) -> (i32, i32) {
    %c0_i32 = arith.constant 0 : i32
    %c0_i32_0 = arith.constant 0 : i32
    %c0_i32_1 = arith.constant 0 : i32
    return %c0_i32, %c0_i32_0 : i32, i32
  }
  func.func @transform_5(%arg0: i32) -> (i32, i32) {
    %c0_i32 = arith.constant 0 : i32
    %c0_i32_0 = arith.constant 0 : i32
    %c0_i32_1 = arith.constant 0 : i32
    return %c0_i32, %c0_i32_0 : i32, i32
  }
  func.func @transform_6(%arg0: i32) -> (i32, i32) {
    %c0_i32 = arith.constant 0 : i32
    %c0_i32_0 = arith.constant 0 : i32
    %c0_i32_1 = arith.constant 0 : i32
    return %c0_i32, %c0_i32_0 : i32, i32
  }
  func.func @transform_7(%arg0: i32) -> (i32, i32) {
    %c0_i32 = arith.constant 0 : i32
    %c0_i32_0 = arith.constant 0 : i32
    return %arg0, %c0_i32 : i32, i32
  }
}

</mosaic_0001>

<bundles_post_ra>
// kernel: tpu_custom_call.1
= control target key start
LH: loop header
LB: loop body
LE: loop exit
PB: predicated region body
PF: predicated region fallthrough
CT: control target
= control target key end

     0   :  { %12 = vsyncpa [#allocation3], 0  ;;  %s1094_s0 = inlined_call_operand.hbm [shape: f32[8,512], index: 0, kind: input, shape index: {}]   ;;  %s1095_s1 = inlined_call_operand.hbm [shape: bf16[512,128], index: 1, kind: input, shape index: {}]   ;;  %s1096_s2 = inlined_call_operand.vmem [shape: f32[1,128], index: 2, kind: input, shape index: {}]   ;;  %s1097_s3 = inlined_call_operand.vmem [shape: bf16[128,128], index: 3, kind: input, shape index: {}]   ;;  %s1098_s4 = inlined_call_operand.vmem [shape: f32[1,128], index: 4, kind: input, shape index: {}]   ;;  %s1099_s5 = inlined_call_operand.vmem [shape: bf16[128,8], index: 5, kind: input, shape index: {}]   ;;  %s1100_s6 = inlined_call_operand.vmem [shape: f32[1,8], index: 6, kind: input, shape index: {}]   ;;  %s1101_s7 = inlined_call_operand.hbm [shape: f32[8,8], index: 7, kind: output, shape index: {}]  }
   0x1   :  { %13 = vsyncpa [#allocation6], 0 }
   0x2   :  { %14 = vsyncpa [#allocation4], 0  ;;  %s929_s24 = smov [#allocation2]   ;;  %s930_s26 = smov [#allocation5]  }
   0x3   :  { %s21_s25 = sshll.u32 %s929_s24, 4  ;;  %s30_s27 = sshll.u32 %s930_s26, 4  ;;  %s22_s25 = int_to_ptr.vmem [resolvable:$true] %s21_s25  ;;  %s976_s27 = int_to_ptr.vmem [resolvable:$true] %s30_s27 }
   0x4   :  { %s857_s30 = scalar_lea.hbm %s1094_s0, 512 }
   0x5   :  { %p858_p0 = scmp.ne.s32.totalorder %s1094_s0, %s857_s30  ;;  %p861_p1 = scmp.lt.u32.totalorder %s857_s30, %s1094_s0 }
   0x7   :  { %p863_p2 = pnand %p861_p1, %p858_p0 }
   0x9   :  { %866 = shalt.err (!%p863_p2)
}
   0xa   :  { %s867_s12 = scalar_lea.vmem %s22_s25, 512  ;;  %p872_p4 = scmp.lt.s32.totalorder %s22_s25, %s22_s25 }
   0xb   :  { %p868_p3 = scmp.ne.s32.totalorder %s22_s25, %s867_s12  ;;  %p873_p5 = scmp.lt.s32.totalorder %s867_s12, %s867_s12 }
   0xd   :  { %p874_p6 = por %p873_p5, %p872_p4 }
   0xf   :  { %p875_p7 = pnand %p874_p6, %p868_p3 }
  0x11   :  { %878 = shalt.err (!%p875_p7)
}
  0x12   :  { %24 = dma.hbm_to_vmem [thread:$0]  %s1094_s0, 512, %s22_s25, [#allocation3]  }
  0x13   :  { %s879_s17 = scalar_lea.hbm %s1095_s1, 4096 }
  0x14   :  { %p880_p8 = scmp.ne.s32.totalorder %s1095_s1, %s879_s17  ;;  %p883_p9 = scmp.lt.u32.totalorder %s879_s17, %s1095_s1 }
  0x16   :  { %p885_p10 = pnand %p883_p9, %p880_p8 }
  0x18   :  { %888 = shalt.err (!%p885_p10)
}
  0x19   :  { %s889_s22 = scalar_lea.vmem %s976_s27, 4096  ;;  %p894_p12 = scmp.lt.s32.totalorder %s976_s27, %s976_s27 }
  0x1a   :  { %p890_p11 = scmp.ne.s32.totalorder %s976_s27, %s889_s22  ;;  %p895_p13 = scmp.lt.s32.totalorder %s889_s22, %s889_s22 }
  0x1c   :  { %p896_p0 = por %p895_p13, %p894_p12 }
  0x1e   :  { %p897_p1 = pnand %p896_p0, %p890_p11 }
  0x20   :  { %900 = shalt.err (!%p897_p1)
}
  0x21   :  { %s931_s0 = smov 64   ;;  %s932_s23 = smov 4  }
  0x22   :  { %36 = dma.hbm_to_vmem [thread:$0]  %s1095_s1, 4096, %s976_s27, [#allocation6], %s931_s0, %s931_s0, %s932_s23  }
  0x23   :  { %923 = dma.done.wait [#allocation3], 512  }
  0x24   :  { %924 = vsyncadd [#allocation3], 4294966784 }
  0x25   :  { %925 = dma.done.wait [#allocation6], 4096  }
  0x26   :  { %926 = vsyncadd [#allocation6], 4294963200  ;;  %v809_v0 = vld [vmem:[#allocation5 + $0x40] sm:$0xff]   ;;  %v813_v4 = vld [vmem:[#allocation5 + $0x48] sm:$0xff]   ;;  %v933_v39 = vmov 0.0   ;;  %vm934_vm0 = vmmov 0  }
  0x27   :  { %v810_v1 = vld [vmem:[#allocation5 + $0xc0] sm:$0xff]   ;;  %700 = vmatprep.subr.bf16.mxu0 %v809_v0  ;;  %v814_v5 = vld [vmem:[#allocation5 + $0xc8] sm:$0xff]   ;;  %v817_v8 = vld [vmem:[#allocation5 + $0x50] sm:$0xff]   ;;  %s935_s13 = smov [#allocation7]   ;;  %vm631_vm1 = vcmask 64512  }
  0x28   :  { %v811_v2 = vld [vmem:[#allocation5] sm:$0xff]   ;;  %722 = vmatprep.subr.bf16.mxu1 %v810_v1  ;;  %v815_v6 = vld [vmem:[#allocation5 + $0x8] sm:$0xff]   ;;  %v818_v9 = vld [vmem:[#allocation5 + $0xd0] sm:$0xff]   ;;  %s639_s14 = sshll.u32 %s935_s13, 4  ;;  %s640_s14 = int_to_ptr.vmem [resolvable:$true] %s639_s14 }
  0x29   :  { %v812_v3 = vld [vmem:[#allocation5 + $0x80] sm:$0xff]   ;;  %701 = vmatpush3.bf16.msra.mxu0 %v811_v2  ;;  %v816_v7 = vld [vmem:[#allocation5 + $0x88] sm:$0xff]   ;;  %v819_v10 = vld [vmem:[#allocation5 + $0x10] sm:$0xff]   ;;  %p906_p3 = scmp.lt.s32.totalorder %s640_s14, %s640_s14 }
  0x2a   :  { %723 = vmatpush3.bf16.msra.mxu1 %v812_v3  ;;  %702 = vmatprep.subr.bf16.mxu0 %v813_v4  ;;  %v820_v11 = vld [vmem:[#allocation5 + $0x90] sm:$0xff]   ;;  %v821_v12 = vld [vmem:[#allocation5 + $0x58] sm:$0xff]   ;;  %v825_v16 = vld [vmem:[#allocation5 + $0x60] sm:$0xff]  }
  0x2b   :  { %724 = vmatprep.subr.bf16.mxu1 %v814_v5  ;;  %v822_v13 = vld [vmem:[#allocation5 + $0xd8] sm:$0xff]   ;;  %v826_v17 = vld [vmem:[#allocation5 + $0xe0] sm:$0xff]   ;;  %v829_v20 = vld [vmem:[#allocation5 + $0x68] sm:$0xff]  }
  0x2c   :  { %v823_v14 = vld [vmem:[#allocation5 + $0x18] sm:$0xff]   ;;  %v827_v18 = vld [vmem:[#allocation5 + $0x20] sm:$0xff]   ;;  %v830_v21 = vld [vmem:[#allocation5 + $0xe8] sm:$0xff]  }
  0x2d   :  { %703 = vmatpush3.bf16.msra.mxu0 %v815_v6  ;;  %v824_v15 = vld [vmem:[#allocation5 + $0x98] sm:$0xff]   ;;  %v828_v19 = vld [vmem:[#allocation5 + $0xa0] sm:$0xff]   ;;  %v831_v22 = vld [vmem:[#allocation5 + $0x28] sm:$0xff]  }
  0x2e   :  { %725 = vmatpush3.bf16.msra.mxu1 %v816_v7  ;;  %704 = vmatprep.subr.bf16.mxu0 %v817_v8  ;;  %v832_v23 = vld [vmem:[#allocation5 + $0xa8] sm:$0xff]   ;;  %v833_v24 = vld [vmem:[#allocation5 + $0x70] sm:$0xff]   ;;  %v837_v28 = vld [vmem:[#allocation5 + $0x78] sm:$0xff]  }
  0x2f   :  { %726 = vmatprep.subr.bf16.mxu1 %v818_v9  ;;  %v834_v25 = vld [vmem:[#allocation5 + $0xf0] sm:$0xff]   ;;  %v838_v29 = vld [vmem:[#allocation5 + $0xf8] sm:$0xff]   ;;  %v55_v32 = vld [vmem:[#allocation2 + $0x8] sm:$0xff] }
  0x30   :  { %v835_v26 = vld [vmem:[#allocation5 + $0x30] sm:$0xff]   ;;  %v839_v30 = vld [vmem:[#allocation5 + $0x38] sm:$0xff]   ;;  %v54_v34 = vld [vmem:[#allocation2] sm:$0xff]  ;;  %v59_v35 = vpack.c.bf16 %v55_v32, %v55_v32 }
  0x31   :  { %705 = vmatpush3.bf16.msra.mxu0 %v819_v10  ;;  %v836_v27 = vld [vmem:[#allocation5 + $0xb0] sm:$0xff]   ;;  %v840_v31 = vld [vmem:[#allocation5 + $0xb8] sm:$0xff]   ;;  %v58_v37 = vpack.c.bf16 %v54_v34, %v54_v34  ;;  %v841_v41 = vld [vmem:[%s1097_s3] sm:$0xff]  }
  0x32   :  { %727 = vmatpush3.bf16.msra.mxu1 %v820_v11  ;;  %706 = vmatprep.subr.bf16.mxu0 %v821_v12  ;;  %v57_v33 = vld [vmem:[#allocation2 + $0x18] sm:$0xff]  ;;  %v56_v38 = vld [vmem:[#allocation2 + $0x10] sm:$0xff]  ;;  %v842_v42 = vld [vmem:[%s1097_s3 + $0x8] sm:$0xff]  }
  0x33   :  { %728 = vmatprep.subr.bf16.mxu1 %v822_v13  ;;  %v61_v36 = vpack.c.bf16 %v57_v33, %v57_v33  ;;  %v60_v40 = vpack.c.bf16 %v56_v38, %v56_v38  ;;  %357 = vmatprep.mubr.bf16.mxu0 %v59_v35  ;;  %v843_v43 = vld [vmem:[%s1097_s3 + $0x10] sm:$0xff]   ;;  %v844_v44 = vld [vmem:[%s1097_s3 + $0x18] sm:$0xff]   ;;  %v845_v45 = vld [vmem:[%s1097_s3 + $0x20] sm:$0xff]  }
  0x34   :  { %v846_v46 = vld [vmem:[%s1097_s3 + $0x28] sm:$0xff]   ;;  %v847_v47 = vld [vmem:[%s1097_s3 + $0x30] sm:$0xff]   ;;  %v848_v48 = vld [vmem:[%s1097_s3 + $0x38] sm:$0xff]  }
  0x35   :  { %707 = vmatpush3.bf16.msra.mxu0 %v823_v14  ;;  %397 = vmatprep.mubr.bf16.mxu1 %v61_v36  ;;  %v849_v49 = vld [vmem:[%s1099_s5] sm:$0xff]   ;;  %v850_v50 = vld [vmem:[%s1099_s5 + $0x8] sm:$0xff]   ;;  %v851_v51 = vld [vmem:[%s1099_s5 + $0x10] sm:$0xff]  }
  0x36   :  { %729 = vmatpush3.bf16.msra.mxu1 %v824_v15  ;;  %708 = vmatprep.subr.bf16.mxu0 %v825_v16  ;;  %v852_v52 = vld [vmem:[%s1099_s5 + $0x18] sm:$0xff]   ;;  %v853_v53 = vld [vmem:[%s1099_s5 + $0x20] sm:$0xff]   ;;  %v854_v54 = vld [vmem:[%s1099_s5 + $0x28] sm:$0xff]  }
  0x37   :  { %730 = vmatprep.subr.bf16.mxu1 %v826_v17  ;;  %v649_v57 = vld [vmem:[%s1096_s2] ss:$0 sm:$0xff]  ;;  %v855_v6 = vld [vmem:[%s1099_s5 + $0x30] sm:$0xff]   ;;  %v856_v7 = vld [vmem:[%s1099_s5 + $0x38] sm:$0xff]  }
  0x38   :  { %v682_v8 = vld [vmem:[%s1098_s4] ss:$0 sm:$0xff]  ;;  %s901_s4 = scalar_lea.vmem %s640_s14, 128 }
  0x39   :  { %709 = vmatpush3.bf16.msra.mxu0 %v827_v18  ;;  %v691_v16 = vld [vmem:[%s1100_s6] ss:$0 sm:$0xff]  ;;  %p902_p2 = scmp.ne.s32.totalorder %s640_s14, %s901_s4  ;;  %p907_p4 = scmp.lt.s32.totalorder %s901_s4, %s901_s4 }
  0x3a   :  { %731 = vmatpush3.bf16.msra.mxu1 %v828_v19  ;;  %710 = vmatprep.subr.bf16.mxu0 %v829_v20 }
  0x3b   :  { %732 = vmatprep.subr.bf16.mxu1 %v830_v21  ;;  %p908_p5 = por %p907_p4, %p906_p3 }
  0x3d   :  { %711 = vmatpush3.bf16.msra.mxu0 %v831_v22  ;;  %p909_p6 = pnand %p908_p5, %p902_p2 }
  0x3e   :  { %733 = vmatpush3.bf16.msra.mxu1 %v832_v23  ;;  %712 = vmatprep.subr.bf16.mxu0 %v833_v24 }
  0x3f   :  { %734 = vmatprep.subr.bf16.mxu1 %v834_v25 }
  0x41   :  { %713 = vmatpush3.bf16.msra.mxu0 %v835_v26 }
  0x42   :  { %735 = vmatpush3.bf16.msra.mxu1 %v836_v27  ;;  %714 = vmatprep.subr.bf16.mxu0 %v837_v28 }
  0x43   :  { %736 = vmatprep.subr.bf16.mxu1 %v838_v29 }
  0x45   :  { %715 = vmatpush3.bf16.msra.mxu0 %v839_v30 }
  0x46   :  { %737 = vmatpush3.bf16.msra.mxu1 %v840_v31  ;;  %762 = vmatprep.subr.bf16.mxu0 %v933_v39 }
  0x47   :  { %782 = vmatprep.subr.bf16.mxu1 %v933_v39 }
  0x48   :  { %358 = vmatmul.mubr.bf16.vlgmr.msra.gmra.mrb[0].mxu0 %v58_v37 }
  0x49   :  { %398 = vmatmul.mubr.bf16.vlgmr.msra.gmra.mrb[0].mxu1 %v60_v40  ;;  %763 = vmatpush3.bf16.msra.mxu0 %v841_v41 }
  0x4a   :  { %764 = vmatprep.subr.bf16.mxu0 %v933_v39  ;;  %778 = vmatprep.mubr.msk.bf16.mxu0 %vm934_vm0, %v933_v39 }
  0x4b   :  { %798 = vmatprep.mubr.msk.bf16.mxu1 %vm934_vm0, %v933_v39  ;;  %783 = vmatpush3.bf16.msra.mxu1 %v849_v49 }
  0x4c   :  { %784 = vmatprep.subr.bf16.mxu1 %v933_v39 }
  0x4d   :  { %765 = vmatpush3.bf16.msra.mxu0 %v842_v42 }
  0x4e   :  { %766 = vmatprep.subr.bf16.mxu0 %v933_v39 }
  0x4f   :  { %785 = vmatpush3.bf16.msra.mxu1 %v850_v50 }
  0x50   :  { %786 = vmatprep.subr.bf16.mxu1 %v933_v39 }
  0x51   :  { %767 = vmatpush3.bf16.msra.mxu0 %v843_v43 }
  0x52   :  { %768 = vmatprep.subr.bf16.mxu0 %v933_v39 }
  0x53   :  { %787 = vmatpush3.bf16.msra.mxu1 %v851_v51 }
  0x54   :  { %788 = vmatprep.subr.bf16.mxu1 %v933_v39 }
  0x55   :  { %769 = vmatpush3.bf16.msra.mxu0 %v844_v44 }
  0x56   :  { %770 = vmatprep.subr.bf16.mxu0 %v933_v39 }
  0x57   :  { %789 = vmatpush3.bf16.msra.mxu1 %v852_v52 }
  0x58   :  { %790 = vmatprep.subr.bf16.mxu1 %v933_v39 }
  0x59   :  { %771 = vmatpush3.bf16.msra.mxu0 %v845_v45 }
  0x5a   :  { %772 = vmatprep.subr.bf16.mxu0 %v933_v39 }
  0x5b   :  { %791 = vmatpush3.bf16.msra.mxu1 %v853_v53 }
  0x5c   :  { %792 = vmatprep.subr.bf16.mxu1 %v933_v39 }
  0x5d   :  { %773 = vmatpush3.bf16.msra.mxu0 %v846_v46 }
  0x5e   :  { %774 = vmatprep.subr.bf16.mxu0 %v933_v39 }
  0x5f   :  { %793 = vmatpush3.bf16.msra.mxu1 %v854_v54 }
  0x60   :  { %794 = vmatprep.subr.bf16.mxu1 %v933_v39 }
  0x61   :  { %775 = vmatpush3.bf16.msra.mxu0 %v847_v47 }
  0x62   :  { %776 = vmatprep.subr.bf16.mxu0 %v933_v39 }
  0x63   :  { %795 = vmatpush3.bf16.msra.mxu1 %v855_v6 }
  0x64   :  { %796 = vmatprep.subr.bf16.mxu1 %v933_v39 }
  0x65   :  { %777 = vmatpush3.bf16.msra.mxu0 %v848_v48 }
  0x67   :  { %797 = vmatpush3.bf16.msra.mxu1 %v856_v7 }
 0x11b   :  { %v716_v55 = vpop.f32.mrb[0].mxu0 }
 0x11c   :  { %v738_v56 = vpop.f32.mrb[0].mxu1  ;;  %v717_v58 = vpop.f32.mrb[1].mxu0 }
 0x11d   :  { %v739_v59 = vpop.f32.mrb[1].mxu1  ;;  %v718_v60 = vadd.f32 %v717_v58, %v716_v55  ;;  %v719_v62 = vpop.f32.mrb[2].mxu0 }
 0x11e   :  { %v740_v61 = vadd.f32 %v739_v59, %v738_v56  ;;  %v741_v63 = vpop.f32.mrb[2].mxu1  ;;  %v720_v0 = vpop.f32.mrb[3].mxu0 }
 0x11f   :  { %v742_v1 = vpop.f32.mrb[3].mxu1  ;;  %v360_v2 = vadd.f32 %v718_v60, %v649_v57 }
 0x121   :  { %v400_v3 = vadd.f32 %v740_v61, %v360_v2 }
 0x123   :  { %v405_v4 = vmax.f32 %v400_v3, 0.0 }
 0x125   :  { %v406_v5 = vpack.c.bf16 %v405_v4, %v405_v4 }
 0x127   :  { %779 = vmatmul.mubr.bf16.vlgmr.msra.gmra.mrb[4].mxu0 %v406_v5 }
 0x1fa   :  { %v512_v9 = vpop.f32.mrb[4].mxu0 }
 0x1fb   :  { %v513_v10 = vadd.f32 %v682_v8, %v512_v9  ;;  %v780_v11 = vpop.f32.mrb[5].mxu0 }
 0x1fc   :  { %v515_v12 = vpop.f32.mrb[6].mxu0 }
 0x1fd   :  { %v518_v13 = vmax.f32 %v513_v10, 0.0  ;;  %v781_v14 = vpop.f32.mrb[7].mxu0 }
 0x1ff   :  { %v519_v15 = vpack.c.bf16 %v518_v13, %v518_v13 }
 0x201   :  { %799 = vmatmul.mubr.bf16.vlgmr.msra.gmra.mrb[4].mxu1 %v519_v15 }
 0x2d4   :  { %v625_v17 = vpop.f32.mrb[4].mxu1 }
 0x2d5   :  { %v626_v18 = vadd.f32 %v691_v16, %v625_v17  ;;  %v800_v19 = vpop.f32.mrb[5].mxu1 }
 0x2d6   :  { %v628_v20 = vpop.f32.mrb[6].mxu1 }
 0x2d7   :  { %v801_v21 = vpop.f32.mrb[7].mxu1  ;;  %632 = vst.msk [vmem:[#allocation7] sm:$0xff] %vm631_vm1, %v626_v18 }
 0x2d8   :  { %912 = shalt.err (!%p909_p6)
}
 0x2d9   :  { %s913_s6 = scalar_lea.hbm %s1101_s7, 128 }
 0x2da   :  { %p914_p7 = scmp.ne.s32.totalorder %s1101_s7, %s913_s6  ;;  %p917_p8 = scmp.lt.u32.totalorder %s913_s6, %s1101_s7 }
 0x2dc   :  { %p919_p9 = pnand %p917_p8, %p914_p7 }
 0x2de   :  { %922 = shalt.err (!%p919_p9)
}
 0x2df   :  { %642 = dma.vmem_to_hbm [thread:$0]  %s640_s14, 128, %s1101_s7, [#allocation4]  }
 0x2e0   :  { %927 = dma.done.wait [#allocation4], 128  }
 0x2e1   :  { %928 = vsyncadd [#allocation4], 4294967168 }
 0x2e2   :  { %646 = vsyncpa [#allocation3], 1 }
 0x2e3   :  { %647 = vsyncpa [#allocation6], 1 }
 0x2e4   :  { %648 = vsyncpa [#allocation4], 1 }

</bundles_post_ra>
